<compile_context>
chip_gen: v7x
topology: tpu7x:2x2x1
jax: 0.10.0
libtpu: 0.0.40
codegen_flags: <defaults>
</compile_context>

<pallas_src>
import math
from functools import partial

import jax
import jax.numpy as jnp
from jax.experimental import pallas as pl
from jax.experimental.pallas import tpu as pltpu


def _cdiv(a, b):
    return -(-a // b)


def _dyt_kernel(alpha_ref, w_ref, b_ref, x_ref, o_ref):
    # alpha_ref: SMEM (1,) f32 scalar
    # w_ref, b_ref: VMEM (1, col_tile) f32 rows, broadcast over the row axis
    # x_ref, o_ref: VMEM (row_tile, col_tile) tiles
    alpha = alpha_ref[0]
    x = x_ref[...].astype(jnp.float32)
    y = jnp.tanh(alpha * x) * w_ref[...] + b_ref[...]
    o_ref[...] = y.astype(o_ref.dtype)


def _x_block_spec(shape, index_map, total_steps):
    """x-tile BlockSpec with a 3-deep input pipeline when it can help."""
    if total_steps >= 3:
        try:
            return pl.BlockSpec(shape, index_map, pipeline_mode=pl.Buffered(3))
        except Exception:  # older jax without pipeline_mode / Buffered
            pass
    return pl.BlockSpec(shape, index_map)


def _device_defaults():
    """(target_tile_bytes, num_tensorcores) for the current TPU generation."""
    try:
        kind = jax.devices()[0].device_kind.lower()
    except Exception:
        kind = ""
    if "v7" in kind:
        return 6 << 20, 2            # v7x: ~3.2 TB/s HBM, 2 TCs, 64 MiB VMEM
    if "v4" in kind or "v5p" in kind:
        return 2 << 20, 2            # megacore parts
    return 2 << 20, 1                # v5e / v6e / fallback


def _dyt_2d(x2d, alpha_arr, w_row, b_row, *, target_tile_bytes, num_cores):
    """Run DyT on a flat [rows, cols] slab. w_row/b_row are (1, cols) f32."""
    Rr, Cp = x2d.shape
    itemsize = jnp.dtype(x2d.dtype).itemsize
    sub = {4: 8, 2: 16, 1: 32}.get(itemsize, 8)   # sublane packing granularity

    # ---- feature-axis tiling (wide-C fallback) ----------------------------
    # If even one sublane-slab of the full width exceeds the byte budget,
    # tile the feature axis in multiples of 128 (ragged last block is masked).
    if Cp <= 128 or sub * Cp * itemsize <= target_tile_bytes:
        col_tile = Cp                              # full extent: always legal
    else:
        col_tile = max(128, (target_tile_bytes // (sub * itemsize)) // 128 * 128)
    n_col = _cdiv(Cp, col_tile)

    # ---- row tiling: fill the byte budget, no fixed row cap ---------------
    rows = max(sub, (target_tile_bytes // (col_tile * itemsize)) // sub * sub)

    # Keep enough grid steps so megacore parts can use every TensorCore.
    min_steps = max(2, 2 * num_cores)
    if n_col * _cdiv(Rr, rows) < min_steps:
        per_col_steps = max(1, _cdiv(min_steps, n_col))
        cap = _cdiv(_cdiv(Rr, per_col_steps), sub) * sub
        rows = max(sub, min(rows, cap))

    row_tile = Rr if rows >= Rr else rows
    grid = (_cdiv(Rr, row_tile), n_col)
    total_steps = grid[0] * grid[1]

    # Explicit scoped-VMEM budget: up to 3 input + 2 output buffers per tile
    # plus the (tiny) resident weight/bias rows, with slack.  Clamped to a
    # range that is safe on every generation's physical VMEM.
    tile_bytes = row_tile * col_tile * itemsize
    wb_bytes = 2 * 2 * col_tile * 4
    vmem_limit = int(min(max(5 * tile_bytes + 2 * wb_bytes + (2 << 20),
                             24 << 20), 48 << 20))

    return pl.pallas_call(
        _dyt_kernel,
        out_shape=jax.ShapeDtypeStruct((Rr, Cp), x2d.dtype),
        grid_spec=pl.GridSpec(
            grid=grid,
            in_specs=[
                pl.BlockSpec(memory_space=pltpu.MemorySpace.SMEM),      # alpha
                pl.BlockSpec((1, col_tile), lambda i, j: (0, j)),       # weight
                pl.BlockSpec((1, col_tile), lambda i, j: (0, j)),       # bias
                _x_block_spec((row_tile, col_tile), lambda i, j: (i, j),
                              total_steps),                             # x
            ],
            out_specs=pl.BlockSpec((row_tile, col_tile), lambda i, j: (i, j)),
        ),
        compiler_params=pltpu.CompilerParams(
            dimension_semantics=("parallel", "parallel"),
            vmem_limit_bytes=vmem_limit,
        ),
    )(alpha_arr, w_row, b_row, x2d)


@partial(jax.jit, static_argnames=("target_tile_bytes", "num_cores"))
def dyt_forward(x, alpha, weight, bias, *, target_tile_bytes=None, num_cores=None):
    """DyT forward: tanh(alpha * x) * weight + bias, features on last axis."""
    orig_shape = x.shape
    C = orig_shape[-1]
    assert weight.shape == (C,) and bias.shape == (C,)

    dflt_bytes, dflt_cores = _device_defaults()
    if target_tile_bytes is None:
        target_tile_bytes = dflt_bytes
    if num_cores is None:
        num_cores = dflt_cores

    R = int(math.prod(orig_shape[:-1])) if len(orig_shape) > 1 else 1
    x2d = x.reshape(R, C)

    alpha_arr = jnp.asarray(alpha, jnp.float32).reshape(1)
    w_f32 = weight.astype(jnp.float32)
    b_f32 = bias.astype(jnp.float32)

    run = partial(_dyt_2d, target_tile_bytes=target_tile_bytes,
                  num_cores=num_cores)

    # Lane-density fold: fold k rows into the lane axis so the stored last
    # dim is a multiple of 128 (unmasked, full-lane stores).
    k = 128 // math.gcd(C, 128) if C % 128 != 0 else 1
    if k > 1:
        r_main = (R // k) * k
        parts = []
        if r_main > 0:
            out_main = run(
                x2d[:r_main].reshape(r_main // k, C * k),
                alpha_arr,
                jnp.tile(w_f32, k).reshape(1, C * k),
                jnp.tile(b_f32, k).reshape(1, C * k),
            )
            parts.append(out_main.reshape(r_main, C))
        if r_main < R:
            # <= k-1 leftover rows: one tiny unfolded call (masked stores are
            # irrelevant at this size; avoids padding / re-streaming x).
            parts.append(run(x2d[r_main:], alpha_arr,
                             w_f32.reshape(1, C), b_f32.reshape(1, C)))
        out2d = parts[0] if len(parts) == 1 else jnp.concatenate(parts, axis=0)
    else:
        out2d = run(x2d, alpha_arr, w_f32.reshape(1, C), b_f32.reshape(1, C))

    return out2d.reshape(orig_shape)


def _ref(x, alpha, weight, bias):
    y = jnp.tanh(jnp.float32(alpha) * x.astype(jnp.float32))
    y = y * weight.astype(jnp.float32) + bias.astype(jnp.float32)
    return y.astype(x.dtype)


if __name__ == "__main__":
    key = jax.random.PRNGKey(0)
    k1, k2, k3, k4 = jax.random.split(key, 4)
    alpha = jnp.float32(0.5)                      # DyT.__init__ default

    # Case 1: [B, N, C] with C=32 — lane fold with R % k == 0.
    B, N, C = 2, 8, 32
    x1 = jax.random.normal(k1, (B, N, C), jnp.float32)
    w1 = jnp.ones((C,), jnp.float32)
    b1 = jnp.zeros((C,), jnp.float32)
    y1 = jax.block_until_ready(dyt_forward(x1, alpha, w1, b1))
    assert y1.shape == x1.shape
    assert jnp.allclose(y1, _ref(x1, alpha, w1, b1), atol=1e-6, rtol=1e-6)

    # Case 2: lane fold with a non-divisible row count (prefix + tail path).
    x2 = jax.random.normal(k2, (3, 5, 32), jnp.float32)   # R=15, k=4
    w2 = jax.random.normal(k3, (32,), jnp.float32)
    b2 = jax.random.normal(k4, (32,), jnp.float32)
    y2 = jax.block_until_ready(dyt_forward(x2, alpha, w2, b2))
    assert jnp.allclose(y2, _ref(x2, alpha, w2, b2), atol=1e-5, rtol=1e-5)

    # Case 3: bf16 input, C multiple of 128, ragged last row block.
    x3 = jax.random.normal(k3, (2, 24, 128), jnp.bfloat16)
    w3 = jax.random.normal(k1, (128,), jnp.float32)
    b3 = jax.random.normal(k2, (128,), jnp.float32)
    y3 = jax.block_until_ready(dyt_forward(x3, alpha, w3, b3))
    assert jnp.allclose(y3.astype(jnp.float32),
                        _ref(x3, alpha, w3, b3).astype(jnp.float32),
                        atol=2e-2, rtol=2e-2)

    # Case 4: exercise the wide-C 2-D grid fallback with a tiny byte budget.
    x4 = jax.random.normal(k4, (64, 512), jnp.float32)
    w4 = jax.random.normal(k2, (512,), jnp.float32)
    b4 = jax.random.normal(k3, (512,), jnp.float32)
    y4 = jax.block_until_ready(
        dyt_forward(x4, alpha, w4, b4, target_tile_bytes=8 << 10, num_cores=1))
    assert jnp.allclose(y4, _ref(x4, alpha, w4, b4), atol=1e-5, rtol=1e-5)

    print("KERNEL_OK")
</pallas_src>

<mosaic_0001>
module attributes {stable_mosaic.version = 11 : i64} {
  func.func @_dyt_kernel(%arg0: i32, %arg1: i32, %arg2: memref<1xf32, #tpu.memory_space<smem>>, %arg3: memref<1x128xf32, #tpu.memory_space<vmem>>, %arg4: memref<1x128xf32, #tpu.memory_space<vmem>>, %arg5: memref<4x128xf32, #tpu.memory_space<vmem>>, %arg6: memref<4x128xf32, #tpu.memory_space<vmem>>) attributes {dimension_semantics = [#tpu.dimension_semantics<parallel>, #tpu.dimension_semantics<parallel>], iteration_bounds = array<i64: 1, 1>, scalar_prefetch = 0 : i64, scratch_operands = 0 : i64, tpu.core_type = #tpu.core_type<tc>, window_params = [{transform_indices = @transform_0, window_bounds = array<i64: 1>}, {transform_indices = @transform_1, window_bounds = array<i64: 1, 128>}, {transform_indices = @transform_2, window_bounds = array<i64: 1, 128>}, {transform_indices = @transform_3, window_bounds = array<i64: 4, 128>}, {transform_indices = @transform_4, window_bounds = array<i64: 4, 128>}]} {
    %c0 = arith.constant 0 : index
    %0 = memref.load %arg2[%c0] : memref<1xf32, #tpu.memory_space<smem>>
    %c0_0 = arith.constant 0 : index
    %c0_1 = arith.constant 0 : index
    %1 = vector.load %arg5[%c0_0, %c0_1] : memref<4x128xf32, #tpu.memory_space<vmem>>, vector<4x128xf32>
    %2 = vector.broadcast %0 : f32 to vector<4x128xf32>
    %3 = arith.mulf %2, %1 : vector<4x128xf32>
    %4 = math.tanh %3 : vector<4x128xf32>
    %c0_2 = arith.constant 0 : index
    %c0_3 = arith.constant 0 : index
    %5 = vector.load %arg3[%c0_2, %c0_3] : memref<1x128xf32, #tpu.memory_space<vmem>>, vector<1x128xf32>
    %6 = vector.broadcast %5 : vector<1x128xf32> to vector<4x128xf32>
    %7 = arith.mulf %4, %6 : vector<4x128xf32>
    %c0_4 = arith.constant 0 : index
    %c0_5 = arith.constant 0 : index
    %8 = vector.load %arg4[%c0_4, %c0_5] : memref<1x128xf32, #tpu.memory_space<vmem>>, vector<1x128xf32>
    %9 = vector.broadcast %8 : vector<1x128xf32> to vector<4x128xf32>
    %10 = arith.addf %7, %9 : vector<4x128xf32>
    %c0_6 = arith.constant 0 : index
    %c0_7 = arith.constant 0 : index
    %11 = vector.load %arg6[%c0_6, %c0_7] : memref<4x128xf32, #tpu.memory_space<vmem>>, vector<4x128xf32>
    tpu.vector_store %arg6[%c0_6, %c0_7], %10 {strides = array<i32>} : memref<4x128xf32, #tpu.memory_space<vmem>>, vector<4x128xf32>,
    return
  }
  func.func @transform_0(%arg0: i32, %arg1: i32) -> i32 {
    %c0_i32 = arith.constant 0 : i32
    %c0_i32_0 = arith.constant 0 : i32
    return %c0_i32 : i32
  }
  func.func @transform_1(%arg0: i32, %arg1: i32) -> (i32, i32) {
    %c0_i32 = arith.constant 0 : i32
    %c0_i32_0 = arith.constant 0 : i32
    return %c0_i32, %arg1 : i32, i32
  }
  func.func @transform_2(%arg0: i32, %arg1: i32) -> (i32, i32) {
    %c0_i32 = arith.constant 0 : i32
    %c0_i32_0 = arith.constant 0 : i32
    return %c0_i32, %arg1 : i32, i32
  }
  func.func @transform_3(%arg0: i32, %arg1: i32) -> (i32, i32) {
    %c0_i32 = arith.constant 0 : i32
    return %arg0, %arg1 : i32, i32
  }
  func.func @transform_4(%arg0: i32, %arg1: i32) -> (i32, i32) {
    %c0_i32 = arith.constant 0 : i32
    return %arg0, %arg1 : i32, i32
  }
}

</mosaic_0001>

<bundles_post_ra>
// kernel: tile.14
= control target key start
LH: loop header
LB: loop body
LE: loop exit
PB: predicated region body
PF: predicated region fallthrough
CT: control target
= control target key end

     0   :  { %vm7_vm0 = vcmask 261120   ;;  %s37_s8 = smov 32   ;;  %s38_s9 = smov 64   ;;  %vm13_vm1 = vcmask 1048320   ;;  %vm19_vm2 = vcmask 785920   ;;  %vm25_vm3 = vcmask 523520   ;;  %s55_s0 = inlined_call_operand.vmem [shape: f32[4,32], index: 0, kind: input, shape index: {}]   ;;  %s56_s1 = inlined_call_operand.vmem [shape: f32[1,128], index: 1, kind: output, shape index: {}]  }
   0x1   :  { %v4_v0 = vld [vmem:[%s55_s0] sm:$0xf]  ;;  %s36_s0 = smov 96  }
   0x2   :  { %5 = vst [vmem:[#allocation1] sm:$0xf] %v4_v0 }
   0x9   :  { %v10_v1 = vld [vmem:[#allocation1 + $0x3] sm:$0x1]   ;;  %v22_v2 = vld [vmem:[#allocation1 + $0x1] sm:$0x1]   ;;  %v6_v3 = vld [vmem:[#allocation1] sm:$0x1]  }
   0xa   :  { %11 = vrot.lane.b32.xlu0 %v10_v1, %s36_s0  ;;  %23 = vrot.lane.b32.xlu1 %v22_v2, %s37_s8  ;;  %v16_v4 = vld [vmem:[#allocation1 + $0x2] sm:$0x1]   ;;  %8 = vst.msk [vmem:[#allocation0] sm:$0x1] %vm7_vm0, %v6_v3  }
   0xe   :  { %17 = vrot.lane.b32.xlu0 %v16_v4, %s38_s9 }
  0x7c   :  { %v12_v5 = vpop.permute.xlu0 %11   ;;  %v24_v6 = vpop.permute.xlu1 %23  }
  0x7d   :  { %14 = vst.msk [vmem:[#allocation0] sm:$0x1] %vm13_vm1, %v12_v5  }
  0x80   :  { %v18_v7 = vpop.permute.xlu0 %17  }
  0x81   :  { %20 = vst.msk [vmem:[#allocation0] sm:$0x1] %vm19_vm2, %v18_v7  }
  0x82   :  { %26 = vst.msk [vmem:[#allocation0] sm:$0x1] %vm25_vm3, %v24_v6  }
  0x89   :  { %v30_v8 = vld [vmem:[#allocation0] sm:$0x1] }
  0x8a   :  { %32 = vst [vmem:[%s56_s1] sm:$0x1] %v30_v8 }

// kernel: tile.13
= control target key start
LH: loop header
LB: loop body
LE: loop exit
PB: predicated region body
PF: predicated region fallthrough
CT: control target
= control target key end

     0   :  { %s22_s0 = inlined_call_operand.vmem [shape: f32[32], index: 0, kind: input, shape index: {}]   ;;  %s23_s1 = inlined_call_operand.vmem [shape: f32[4,32], index: 1, kind: output, shape index: {}]  }
   0x1   :  { %v4_v0 = vld [vmem:[%s22_s0] ss:$0 sm:$0xff] }
   0x2   :  { %5 = vst [vmem:[%s23_s1] sm:$0xf] %v4_v0 }

// kernel: dyt_forward.1
= control target key start
LH: loop header
LB: loop body
LE: loop exit
PB: predicated region body
PF: predicated region fallthrough
CT: control target
= control target key end

     0   :  { %s88_s0 = inlined_call_operand.<no memory space> [shape: f32[1], index: 0, kind: input, shape index: {}]   ;;  %s89_s3 = inlined_call_operand.vmem [shape: f32[4,128], index: 3, kind: input, shape index: {}]   ;;  %s90_s1 = inlined_call_operand.vmem [shape: f32[1,128], index: 1, kind: input, shape index: {}]   ;;  %s91_s2 = inlined_call_operand.vmem [shape: f32[1,128], index: 2, kind: input, shape index: {}]   ;;  %s92_s4 = inlined_call_operand.vmem [shape: f32[4,128], index: 4, kind: output, shape index: {}]  }
   0x1   :  { %v19_v0 = vld [vmem:[%s89_s3] sm:$0xf]  ;;  %v20_v1 = vstv %s88_s0 }
   0x2   :  { %v21_v2 = vmul.f32 %v20_v1, %v19_v0  ;;  %v44_v3 = vld [vmem:[%s90_s1] ss:$0 sm:$0xff] }
   0x3   :  { %v45_v5 = vld [vmem:[%s91_s2] ss:$0 sm:$0xff] }
   0x4   :  { %46 = vtanh.f32 %v21_v2 }
   0xe   :  { %v47_v4 = vpop.eup %46 }
   0xf   :  { %v30_v6 = vmul.f32 %v47_v4, %v44_v3 }
  0x11   :  { %v38_v7 = vadd.f32 %v45_v5, %v30_v6 }
  0x13   :  { %39 = vst [vmem:[%s92_s4] sm:$0xf] %v38_v7 }

</bundles_post_ra>
